<compile_context>
chip_gen: v7x
topology: tpu7x:2x2x1
jax: 0.10.0
libtpu: 0.0.40
codegen_flags: <defaults>
</compile_context>

<pallas_src>
import math

import jax
import jax.numpy as jnp
from jax.experimental import pallas as pl
from jax.experimental.pallas import tpu as pltpu

_LANE = 128


def _round_up(x, m):
    return ((x + m - 1) // m) * m


def _sublane_min(dtype):
    # Sub-32-bit dtypes pack along sublanes: min second-to-last tile dim.
    return {4: 8, 2: 16, 1: 32}.get(jnp.dtype(dtype).itemsize, 8)


def _largest_divisor_leq(n, cap):
    cap = max(1, min(cap, n))
    for d in range(cap, 0, -1):
        if n % d == 0:
            return d
    return 1


def prepare_hyp_linear_params(weight, bias=None):
    """One-time layout prep (call at parameter-init / checkpoint-load time).

    weight: [out_features, in_features]  (PyTorch convention)
    bias:   [out_features] or None

    Returns a dict holding the weight pre-transposed to [Kp, N] with K
    zero-padded to a multiple of 128 (so no per-call transpose/pad), and the
    bias reshaped to [1, N].
    """
    N, K = weight.shape
    Kp = _round_up(K, _LANE)
    w_kn = weight.T  # [K, N]
    if Kp != K:
        w_kn = jnp.pad(w_kn, ((0, Kp - K), (0, 0)))
    b = None if bias is None else bias.reshape(1, N)
    return {"w_kn": w_kn, "bias": b, "in_features": K, "out_features": N}


def _make_kernel(has_bias, direct_f32_out, cast_to_bf16):
    """Build the matmul kernel for the given configuration."""

    def _tile(ref):
        v = ref[...]
        if cast_to_bf16 and v.dtype == jnp.float32:
            v = v.astype(jnp.bfloat16)
        return v

    def _init_val(b_ref, shape):
        # Fold the bias into the accumulator init (no epilogue add).
        if has_bias:
            return jnp.broadcast_to(b_ref[...].astype(jnp.float32), shape)
        return jnp.zeros(shape, jnp.float32)

    if direct_f32_out:
        # Output block is resident across the K axis -> accumulate into it
        # directly (no scratch, no final copy).
        def kernel(*refs):
            if has_bias:
                x_ref, w_ref, b_ref, o_ref = refs
            else:
                x_ref, w_ref, o_ref = refs
                b_ref = None
            k = pl.program_id(2)

            @pl.when(k == 0)
            def _():
                o_ref[...] = _init_val(b_ref, o_ref.shape)

            o_ref[...] += jnp.dot(
                _tile(x_ref), _tile(w_ref), preferred_element_type=jnp.float32
            )

    else:
        def kernel(*refs):
            if has_bias:
                x_ref, w_ref, b_ref, o_ref, acc_ref = refs
            else:
                x_ref, w_ref, o_ref, acc_ref = refs
                b_ref = None
            k = pl.program_id(2)

            @pl.when(k == 0)
            def _():
                acc_ref[...] = _init_val(b_ref, acc_ref.shape)

            acc_ref[...] += jnp.dot(
                _tile(x_ref), _tile(w_ref), preferred_element_type=jnp.float32
            )

            @pl.when(k == pl.num_programs(2) - 1)
            def _():
                o_ref[...] = acc_ref[...].astype(o_ref.dtype)

    return kernel


def hyp_linear(
    x,
    weight=None,
    bias=None,
    use_bias=True,
    *,
    prepared=None,
    tm=512,
    tn=512,
    tk=1024,
    cast_to_bf16=False,
    allow_xla_fallback=True,
    split_for_megacore=True,
    vmem_limit_bytes=None,
):
    """Euclidean 'hyperbolic' linear layer: x @ W.T (+ bias).

    Pass `prepared=prepare_hyp_linear_params(weight, bias)` to avoid the
    per-call weight transpose / K-pad (recommended).  Otherwise the raw
    [N, K] weight (+ [N] bias) is prepared on the fly.
    """
    if prepared is None:
        assert weight is not None, "need either `weight` or `prepared`"
        prepared = prepare_hyp_linear_params(weight, bias if use_bias else None)

    w_kn = prepared["w_kn"]  # [Kp, N], K zero-padded to a 128 multiple
    b = prepared["bias"] if use_bias else None
    K = prepared["in_features"]
    N = prepared["out_features"]
    Kp = w_kn.shape[0]

    M, Kx = x.shape
    assert Kx == K, "in_features mismatch"
    has_bias = b is not None

    # Tiny problems: pallas_call fixed cost + lane padding would dominate.
    if allow_xla_fallback and M <= 256 and K <= 256 and N <= 256:
        w_small = w_kn if Kp == K else w_kn[:K]
        out = x @ w_small
        if has_bias:
            out = out + b.astype(out.dtype)
        return out

    # Only the reduction axis needs zero padding; M / N stay ragged and
    # Pallas masks the boundary blocks (OOB N columns of W only pollute
    # masked output columns, OOB M rows of x only pollute masked output rows).
    x_p = x if Kp == K else jnp.pad(x, ((0, 0), (0, Kp - K)))

    sub_min = _sublane_min(x.dtype)

    # --- Tile sizes ---------------------------------------------------------
    # tk must divide Kp (a ragged K block would read garbage into the
    # reduction); Kp is a multiple of 128, so search 128-unit divisors.
    tk = _LANE * _largest_divisor_leq(Kp // _LANE, max(1, tk // _LANE))

    # tn: lane axis of W / out / bias.  Use the full dim when one block
    # suffices (always legal), otherwise a 128-multiple tile with a masked
    # boundary block.
    n_round = _round_up(N, _LANE)
    if n_round <= tn:
        tn = N
    else:
        tn = max(_LANE, (tn // _LANE) * _LANE)

    # tm: sublane axis of x / out, dtype-aware minimum (8 / 16 / 32).
    if M <= tm:
        tm = M
    else:
        tm = max(sub_min, (tm // sub_min) * sub_min)

    grid_m = pl.cdiv(M, tm)
    grid_n = pl.cdiv(N, tn)
    grid_k = Kp // tk

    # v7x has 2 TensorCores sharded over "parallel" grid axes: make sure at
    # least one parallel axis has >= 2 blocks so neither core idles.
    if split_for_megacore and grid_m == 1 and grid_n == 1:
        if n_round >= 2 * _LANE:
            tn = _round_up(n_round // 2, _LANE)
            grid_n = pl.cdiv(N, tn)
        elif M >= 2 * sub_min:
            tm = _round_up(pl.cdiv(M, 2), sub_min)
            grid_m = pl.cdiv(M, tm)

    direct_f32_out = x.dtype == jnp.float32
    kernel = _make_kernel(has_bias, direct_f32_out, cast_to_bf16)

    in_specs = [
        pl.BlockSpec((tm, tk), lambda i, j, k: (i, k)),
        pl.BlockSpec((tk, tn), lambda i, j, k: (k, j)),
    ]
    operands = [x_p, w_kn]
    if has_bias:
        in_specs.append(pl.BlockSpec((1, tn), lambda i, j, k: (0, j)))
        operands.append(b)

    scratch_shapes = []
    if not direct_f32_out:
        scratch_shapes.append(pltpu.VMEM((tm, tn), jnp.float32))

    out = pl.pallas_call(
        kernel,
        out_shape=jax.ShapeDtypeStruct((M, N), x.dtype),
        grid_spec=pltpu.PrefetchScalarGridSpec(
            num_scalar_prefetch=0,
            grid=(grid_m, grid_n, grid_k),
            in_specs=in_specs,
            out_specs=pl.BlockSpec((tm, tn), lambda i, j, k: (i, j)),
            scratch_shapes=scratch_shapes,
        ),
        compiler_params=pltpu.CompilerParams(
            dimension_semantics=("parallel", "parallel", "arbitrary"),
            vmem_limit_bytes=vmem_limit_bytes,
        ),
    )(*operands)
    return out


def init_hyp_linear_params(key, in_features, out_features, dtype=jnp.float32):
    """reset_parameters(): xavier_uniform_(weight, gain=sqrt(2)), bias = 0."""
    gain = math.sqrt(2.0)
    bound = gain * math.sqrt(6.0 / (in_features + out_features))
    weight = jax.random.uniform(
        key, (out_features, in_features), dtype=dtype, minval=-bound, maxval=bound
    )
    bias = jnp.zeros((out_features,), dtype=dtype)
    return weight, bias


if __name__ == "__main__":
    key = jax.random.PRNGKey(0)
    k_x, k_w, k_x2, k_w2 = jax.random.split(key, 4)

    # --- Small shapes consistent with the module (a batch of feature vectors).
    batch, in_features, out_features = 8, 32, 16
    x = jax.random.normal(k_x, (batch, in_features), dtype=jnp.float32)
    weight, bias = init_hyp_linear_params(k_w, in_features, out_features)
    params = prepare_hyp_linear_params(weight, bias)   # one-time layout prep
    ref = x @ weight.T + bias[None, :]

    # Tiny shapes take the XLA fallback path.
    out_small = jax.block_until_ready(hyp_linear(x, prepared=params))
    assert out_small.shape == (batch, out_features)
    assert jnp.allclose(out_small, ref, atol=1e-5, rtol=1e-5)

    # Same tiny shape forced through the Pallas kernel (single-block grid,
    # full-dim blocks, bias folded into the k==0 init).
    out_small_pl = jax.block_until_ready(
        hyp_linear(x, prepared=params, allow_xla_fallback=False)
    )
    assert jnp.allclose(out_small_pl, ref, atol=1e-5, rtol=1e-5)

    # --- Larger ragged shape exercising the tiled grid, masked M/N boundary
    #     blocks (no activation/output pad or slice), and the K reduction.
    M2, K2, N2 = 300, 640, 384
    x2 = jax.random.normal(k_x2, (M2, K2), dtype=jnp.float32)
    w2, b2 = init_hyp_linear_params(k_w2, K2, N2)
    p2 = prepare_hyp_linear_params(w2, b2)
    ref2 = x2 @ w2.T + b2[None, :]

    # Small explicit tiles -> multi-block (3, 3, 5) grid.
    out2 = jax.block_until_ready(
        hyp_linear(x2, prepared=p2, tm=128, tn=128, tk=256,
                   allow_xla_fallback=False)
    )
    assert out2.shape == (M2, N2)
    assert jnp.allclose(out2, ref2, atol=1e-4, rtol=1e-5)

    # Default (large) tiles + megacore N-split path.
    out2b = jax.block_until_ready(
        hyp_linear(x2, prepared=p2, allow_xla_fallback=False)
    )
    assert jnp.allclose(out2b, ref2, atol=1e-4, rtol=1e-5)

    # No-bias path (no bias DMA / init broadcast).
    out_nb = jax.block_until_ready(
        hyp_linear(x2, w2, use_bias=False, allow_xla_fallback=False)
    )
    assert jnp.allclose(out_nb, x2 @ w2.T, atol=1e-4, rtol=1e-5)

    print("KERNEL_OK")
</pallas_src>

<mosaic_0001>
module attributes {stable_mosaic.version = 11 : i64} {
  func.func @kernel(%arg0: i32, %arg1: i32, %arg2: i32, %arg3: memref<8x128xf32, #tpu.memory_space<vmem>>, %arg4: memref<128x16xf32, #tpu.memory_space<vmem>>, %arg5: memref<1x16xf32, #tpu.memory_space<vmem>>, %arg6: memref<8x16xf32, #tpu.memory_space<vmem>>) attributes {dimension_semantics = [#tpu.dimension_semantics<parallel>, #tpu.dimension_semantics<parallel>, #tpu.dimension_semantics<arbitrary>], iteration_bounds = array<i64: 1, 1, 1>, scalar_prefetch = 0 : i64, scratch_operands = 0 : i64, tpu.core_type = #tpu.core_type<tc>, window_params = [{transform_indices = @transform_0, window_bounds = array<i64: 8, 128>}, {transform_indices = @transform_1, window_bounds = array<i64: 128, 16>}, {transform_indices = @transform_2, window_bounds = array<i64: 1, 16>}, {transform_indices = @transform_3, window_bounds = array<i64: 8, 16>}]} {
    %c0_i32 = arith.constant 0 : i32
    %0 = arith.cmpi eq, %arg2, %c0_i32 : i32
    %1 = arith.extui %0 : i1 to i32
    %c0_i32_0 = arith.constant 0 : i32
    %2 = arith.cmpi ne, %1, %c0_i32_0 : i32
    scf.if %2 {
      %c0_8 = arith.constant 0 : index
      %c0_9 = arith.constant 0 : index
      %9 = vector.load %arg5[%c0_8, %c0_9] : memref<1x16xf32, #tpu.memory_space<vmem>>, vector<1x16xf32>
      %10 = vector.shape_cast %9 : vector<1x16xf32> to vector<1x16xf32>
      %11 = vector.broadcast %10 : vector<1x16xf32> to vector<8x16xf32>
      %c0_10 = arith.constant 0 : index
      %c0_11 = arith.constant 0 : index
      %12 = vector.load %arg6[%c0_10, %c0_11] : memref<8x16xf32, #tpu.memory_space<vmem>>, vector<8x16xf32>
      tpu.vector_store %arg6[%c0_10, %c0_11], %11 {strides = array<i32>} : memref<8x16xf32, #tpu.memory_space<vmem>>, vector<8x16xf32>,
    } else {
    }
    %c0 = arith.constant 0 : index
    %c0_1 = arith.constant 0 : index
    %3 = vector.load %arg6[%c0, %c0_1] : memref<8x16xf32, #tpu.memory_space<vmem>>, vector<8x16xf32>
    %c0_2 = arith.constant 0 : index
    %c0_3 = arith.constant 0 : index
    %4 = vector.load %arg3[%c0_2, %c0_3] : memref<8x128xf32, #tpu.memory_space<vmem>>, vector<8x128xf32>
    %c0_4 = arith.constant 0 : index
    %c0_5 = arith.constant 0 : index
    %5 = vector.load %arg4[%c0_4, %c0_5] : memref<128x16xf32, #tpu.memory_space<vmem>>, vector<128x16xf32>
    %cst = arith.constant dense<0.000000e+00> : vector<8x16xf32>
    %6 = tpu.matmul %4, %5, %cst {dimension_numbers = #tpu.dot_dimension_numbers<[1], [0], [0], [1], [0, 0, 1, 1], [], []>} : vector<8x128xf32>, vector<128x16xf32>, vector<8x16xf32> -> vector<8x16xf32>
    %7 = arith.addf %3, %6 : vector<8x16xf32>
    %c0_6 = arith.constant 0 : index
    %c0_7 = arith.constant 0 : index
    %8 = vector.load %arg6[%c0_6, %c0_7] : memref<8x16xf32, #tpu.memory_space<vmem>>, vector<8x16xf32>
    tpu.vector_store %arg6[%c0_6, %c0_7], %7 {strides = array<i32>} : memref<8x16xf32, #tpu.memory_space<vmem>>, vector<8x16xf32>,
    return
  }
  func.func @transform_0(%arg0: i32, %arg1: i32, %arg2: i32) -> (i32, i32) {
    %c0_i32 = arith.constant 0 : i32
    return %arg0, %arg2 : i32, i32
  }
  func.func @transform_1(%arg0: i32, %arg1: i32, %arg2: i32) -> (i32, i32) {
    %c0_i32 = arith.constant 0 : i32
    return %arg2, %arg1 : i32, i32
  }
  func.func @transform_2(%arg0: i32, %arg1: i32, %arg2: i32) -> (i32, i32) {
    %c0_i32 = arith.constant 0 : i32
    %c0_i32_0 = arith.constant 0 : i32
    return %c0_i32, %arg1 : i32, i32
  }
  func.func @transform_3(%arg0: i32, %arg1: i32, %arg2: i32) -> (i32, i32) {
    %c0_i32 = arith.constant 0 : i32
    return %arg0, %arg1 : i32, i32
  }
}

</mosaic_0001>

<bundles_post_ra>
// kernel: tpu_custom_call.1
= control target key start
LH: loop header
LB: loop body
LE: loop exit
PB: predicated region body
PF: predicated region fallthrough
CT: control target
= control target key end

     0   :  { %v238_v3 = vmov 0.0|0.0   ;;  %vm239_vm0 = vmmov 0   ;;  %v240_v6 = vmov 0.0   ;;  %vm26_vm1 = vcmask 130048   ;;  %s330_s0 = inlined_call_operand.vmem [shape: f32[8,128], index: 0, kind: input, shape index: {}]   ;;  %s331_s1 = inlined_call_operand.vmem [shape: f32[128,16], index: 1, kind: input, shape index: {}]   ;;  %s332_s2 = inlined_call_operand.vmem [shape: f32[1,16], index: 2, kind: input, shape index: {}]   ;;  %s333_s3 = inlined_call_operand.hbm [shape: f32[8,16], index: 3, kind: output, shape index: {}]  }
   0x1   :  { %v30_v0 = vld [vmem:[%s331_s1] sm:$0xff]  ;;  %v31_v1 = vld [vmem:[%s331_s1 + $0x8] sm:$0xff]  ;;  %v32_v2 = vld [vmem:[%s331_s1 + $0x10] sm:$0xff]  ;;  %186 = vmatprep.subr.bf16.mxu0 %v238_v3  ;;  %183 = vmatprep.mubr.msk.f32.mxu0 %vm239_vm0, %v240_v6 }
   0x2   :  { %v187_v4 = vpack.c.bf16 %v31_v1, %v30_v0  ;;  %v33_v5 = vld [vmem:[%s331_s1 + $0x18] sm:$0xff]  ;;  %v34_v8 = vld [vmem:[%s331_s1 + $0x20] sm:$0xff]  ;;  %v35_v9 = vld [vmem:[%s331_s1 + $0x28] sm:$0xff] }
   0x3   :  { %v190_v7 = vpack.c.bf16 %v33_v5, %v32_v2  ;;  %v133_v10 = vld [vmem:[%s332_s2] ss:$0 sm:$0xff] }
   0x4   :  { %188 = vmatpush3.bf16.msra.mxu0 %v187_v4  ;;  %27 = vst.msk [vmem:[#allocation2] sm:$0xff] %vm26_vm1, %v133_v10 }
   0x5   :  { %189 = vmatprep.subr.bf16.mxu0 %v238_v3 }
   0x6   :  { %8 = vsyncpa [#allocation3], 0  ;;  %v193_v11 = vpack.c.bf16 %v35_v9, %v34_v8  ;;  %v36_v12 = vld [vmem:[%s331_s1 + $0x30] sm:$0xff]  ;;  %v37_v13 = vld [vmem:[%s331_s1 + $0x38] sm:$0xff]  ;;  %s241_s20 = smov [#allocation2]  }
   0x7   :  { %v196_v14 = vpack.c.bf16 %v37_v13, %v36_v12  ;;  %v38_v15 = vld [vmem:[%s331_s1 + $0x40] sm:$0xff]  ;;  %v39_v16 = vld [vmem:[%s331_s1 + $0x48] sm:$0xff]  ;;  %v40_v18 = vld [vmem:[%s331_s1 + $0x50] sm:$0xff]  ;;  %s125_s21 = sshll.u32 %s241_s20, 4  ;;  %s126_s21 = int_to_ptr.vmem [resolvable:$true] %s125_s21 }
   0x8   :  { %191 = vmatpush3.bf16.msra.mxu0 %v190_v7  ;;  %v199_v17 = vpack.c.bf16 %v39_v16, %v38_v15  ;;  %v41_v19 = vld [vmem:[%s331_s1 + $0x58] sm:$0xff]  ;;  %v42_v21 = vld [vmem:[%s331_s1 + $0x60] sm:$0xff]  ;;  %v43_v22 = vld [vmem:[%s331_s1 + $0x68] sm:$0xff]  ;;  %s214_s22 = scalar_lea.vmem %s126_s21, 128  ;;  %p219_p1 = scmp.lt.s32.totalorder %s126_s21, %s126_s21 }
   0x9   :  { %192 = vmatprep.subr.bf16.mxu0 %v238_v3  ;;  %v202_v20 = vpack.c.bf16 %v41_v19, %v40_v18  ;;  %v205_v23 = vpack.c.bf16 %v43_v22, %v42_v21  ;;  %v44_v24 = vld [vmem:[%s331_s1 + $0x70] sm:$0xff]  ;;  %v45_v25 = vld [vmem:[%s331_s1 + $0x78] sm:$0xff]  ;;  %v29_v27 = vld [vmem:[%s330_s0] sm:$0xff]  ;;  %p215_p0 = scmp.ne.s32.totalorder %s126_s21, %s214_s22  ;;  %p220_p2 = scmp.lt.s32.totalorder %s214_s22, %s214_s22 }
   0xa   :  { %v208_v26 = vpack.c.bf16 %v45_v25, %v44_v24 }
   0xb   :  { %v28_v28 = vld [vmem:[#allocation2] sm:$0xff]  ;;  %p221_p3 = por %p220_p2, %p219_p1 }
   0xc   :  { %194 = vmatpush3.bf16.msra.mxu0 %v193_v11 }
   0xd   :  { %195 = vmatprep.subr.bf16.mxu0 %v238_v3  ;;  %p222_p4 = pnand %p221_p3, %p215_p0 }
  0x10   :  { %197 = vmatpush3.bf16.msra.mxu0 %v196_v14 }
  0x11   :  { %198 = vmatprep.subr.bf16.mxu0 %v238_v3 }
  0x14   :  { %200 = vmatpush3.bf16.msra.mxu0 %v199_v17 }
  0x15   :  { %201 = vmatprep.subr.bf16.mxu0 %v238_v3 }
  0x18   :  { %203 = vmatpush3.bf16.msra.mxu0 %v202_v20 }
  0x19   :  { %204 = vmatprep.subr.bf16.mxu0 %v238_v3 }
  0x1c   :  { %206 = vmatpush3.bf16.msra.mxu0 %v205_v23 }
  0x1d   :  { %207 = vmatprep.subr.bf16.mxu0 %v238_v3 }
  0x20   :  { %209 = vmatpush3.bf16.msra.mxu0 %v208_v26 }
  0x23   :  { %184 = vmatmul.mubr.f32.vlgmr.msra.gmra.mrb[0].mxu0 %v29_v27 }
  0xf6   :  { %v112_v29 = vpop.f32.mrb[0].mxu0 }
  0xf7   :  { %v116_v30 = vadd.f32 %v112_v29, %v28_v28  ;;  %v185_v31 = vpop.f32.mrb[1].mxu0 }
  0xf9   :  { %118 = vst.msk [vmem:[#allocation2] sm:$0xff] %vm26_vm1, %v116_v30 }
  0xfa   :  { %225 = shalt.err (!%p222_p4)
}
  0xfb   :  { %s226_s0 = scalar_lea.hbm %s333_s3, 128 }
  0xfc   :  { %p227_p5 = scmp.ne.s32.totalorder %s333_s3, %s226_s0  ;;  %p230_p6 = scmp.lt.u32.totalorder %s226_s0, %s333_s3 }
  0xfe   :  { %p232_p7 = pnand %p230_p6, %p227_p5 }
 0x100   :  { %235 = shalt.err (!%p232_p7)
}
 0x101   :  { %128 = dma.vmem_to_hbm [thread:$0]  %s126_s21, 128, %s333_s3, [#allocation3]  }
 0x102   :  { %236 = dma.done.wait [#allocation3], 128  }
 0x103   :  { %237 = vsyncadd [#allocation3], 4294967168 }
 0x104   :  { %132 = vsyncpa [#allocation3], 1 }

</bundles_post_ra>
